<compile_context>
chip_gen: v6e
topology: v6e:2x2x1
jax: 0.10.0
libtpu: 0.0.40
codegen_flags: <defaults>
</compile_context>

<pallas_src>
import jax
import jax.numpy as jnp
from jax.experimental import pallas as pl
from jax.experimental.pallas import tpu as pltpu

_LANE = 128


def _round_up(n, m):
    return ((n + m - 1) // m) * m


def _pad_axis(a, size, axis):
    pad = size - a.shape[axis]
    if pad <= 0:
        return a
    widths = [(0, 0)] * a.ndim
    widths[axis] = (0, pad)
    return jnp.pad(a, widths)


def _mlp_compute(x_ref, w1_ref, b1_ref, w2_ref, b2_ref):
    """Shared body: bf16 MXU matmuls, f32 accumulation + f32 VPU epilogue."""
    x = x_ref[...].astype(jnp.bfloat16)            # in-kernel cast (hidden under DMA)
    h = jnp.dot(x, w1_ref[...], preferred_element_type=jnp.float32)
    h = jnp.maximum(h + b1_ref[...], 0.0)          # Linear + ReLU (layer 1), f32
    y = jnp.dot(h.astype(jnp.bfloat16), w2_ref[...],
                preferred_element_type=jnp.float32)
    y = jnp.maximum(y + b2_ref[...], 0.0)          # Linear + ReLU (layer 2), f32
    return y


def dqn_mlp_kernel(x_ref, w1_ref, b1_ref, w2_ref, b2_ref, o_ref):
    # x_ref: (tb, IN)  w1_ref: (IN, HID_P) bf16  b1_ref: (1, HID_P) f32
    # w2_ref: (HID_P, OUT) bf16  b2_ref: (1, OUT) f32  o_ref: (tb, OUT) f32
    o_ref[...] = _mlp_compute(x_ref, w1_ref, b1_ref, w2_ref, b2_ref).astype(o_ref.dtype)


def dqn_greedy_action_kernel(x_ref, w1_ref, b1_ref, w2_ref, b2_ref, a_ref):
    # Fused forward + greedy argmax: returns first index of the max Q per row.
    q = _mlp_compute(x_ref, w1_ref, b1_ref, w2_ref, b2_ref)        # (B, OUT) f32
    col = jax.lax.broadcasted_iota(jnp.int32, q.shape, 1)
    qmax = jnp.max(q, axis=-1, keepdims=True)
    first_max = jnp.min(jnp.where(q == qmax, col, jnp.int32(q.shape[-1])),
                        axis=-1, keepdims=True)
    a_ref[...] = first_max.astype(jnp.int32)


def prepare_params(w1, b1, w2, b2):
    """One-time layout prep (call once, reuse every forward call).

    Hidden width is zero-padded to a multiple of 128 lanes (padding is exact:
    padded hidden columns are relu(0 + 0) = 0 and the corresponding padded w2
    rows are 0). The OUTPUT width is NOT padded — outputs are written at real
    width so no padded slab ever hits HBM. Weights are cast to bf16 once
    (MXU-native); biases stay f32 for the f32 epilogue.
    """
    in_size, hid = w1.shape
    out = w2.shape[1]
    hid_p = _round_up(hid, _LANE)
    w1_p = _pad_axis(w1.astype(jnp.float32), hid_p, 1).astype(jnp.bfloat16)
    b1_p = _pad_axis(b1.astype(jnp.float32).reshape(1, hid), hid_p, 1)
    w2_p = _pad_axis(w2.astype(jnp.float32), hid_p, 0).astype(jnp.bfloat16)
    b2_p = b2.astype(jnp.float32).reshape(1, out)
    return (w1_p, b1_p, w2_p, b2_p)


def dqn_forward(x, padded_params, *, batch_tile=1024):
    """Pallas forward pass of DQN.model. Returns (B, out_size) f32 Q-values."""
    w1_p, b1_p, w2_p, b2_p = padded_params
    B, in_size = x.shape
    hid_p = w1_p.shape[1]
    out = w2_p.shape[1]

    if B <= batch_tile:
        # Small batch: single invocation, no grid, no pipeline machinery.
        # Every operand is one full-array VMEM block; output is real width.
        vmem = pl.BlockSpec(memory_space=pltpu.MemorySpace.VMEM)
        return pl.pallas_call(
            dqn_mlp_kernel,
            out_shape=jax.ShapeDtypeStruct((B, out), jnp.float32),
            in_specs=[vmem, vmem, vmem, vmem, vmem],
            out_specs=vmem,
        )(x, w1_p, b1_p, w2_p, b2_p)

    # Large batch: tile only the batch axis; weights stay resident
    # (index_map constant across the grid). No x padding — Pallas masks the
    # partial final block, so OOB rows never land in the output. Cap the tile
    # so the parallel axis always has >= 2 steps (keeps both v7x TCs busy and
    # balances the split); on v5e/v6e (1 TC) the cap is a no-op.
    tb = min(batch_tile, _round_up(pl.cdiv(B, 2), 8))
    grid = (pl.cdiv(B, tb),)
    return pl.pallas_call(
        dqn_mlp_kernel,
        out_shape=jax.ShapeDtypeStruct((B, out), jnp.float32),
        grid=grid,
        in_specs=[
            pl.BlockSpec((tb, in_size), lambda i: (i, 0)),
            pl.BlockSpec((in_size, hid_p), lambda i: (0, 0)),
            pl.BlockSpec((1, hid_p), lambda i: (0, 0)),
            pl.BlockSpec((hid_p, out), lambda i: (0, 0)),
            pl.BlockSpec((1, out), lambda i: (0, 0)),
        ],
        out_specs=pl.BlockSpec((tb, out), lambda i: (i, 0)),
        compiler_params=pltpu.CompilerParams(
            dimension_semantics=("parallel",)),
    )(x, w1_p, b1_p, w2_p, b2_p)


def dqn_greedy_action(x, padded_params):
    """Fused forward + greedy argmax for the online (small-B) path.

    Returns (B,) int32 actions — 4 bytes/row leave the kernel instead of a
    Q slab plus a separate XLA argmax dispatch.
    """
    w1_p, b1_p, w2_p, b2_p = padded_params
    B = x.shape[0]
    vmem = pl.BlockSpec(memory_space=pltpu.MemorySpace.VMEM)
    a = pl.pallas_call(
        dqn_greedy_action_kernel,
        out_shape=jax.ShapeDtypeStruct((B, 1), jnp.int32),
        in_specs=[vmem, vmem, vmem, vmem, vmem],
        out_specs=vmem,
    )(x, w1_p, b1_p, w2_p, b2_p)
    return a[:, 0]


def init_dqn_params(key, in_size, hid_size, out_size):
    """Deterministic init mimicking PyTorch Linear default U(-1/sqrt(fan_in), +)."""
    k1, k2, k3, k4 = jax.random.split(key, 4)
    bound1 = 1.0 / (in_size ** 0.5)
    bound2 = 1.0 / (hid_size ** 0.5)
    w1 = jax.random.uniform(k1, (in_size, hid_size), jnp.float32, -bound1, bound1)
    b1 = jax.random.uniform(k2, (hid_size,), jnp.float32, -bound1, bound1)
    w2 = jax.random.uniform(k3, (hid_size, out_size), jnp.float32, -bound2, bound2)
    b2 = jax.random.uniform(k4, (out_size,), jnp.float32, -bound2, bound2)
    return w1, b1, w2, b2


def _reference_f32(x, w1, b1, w2, b2):
    return jnp.maximum(jnp.maximum(x @ w1 + b1, 0.0) @ w2 + b2, 0.0)


def _reference_bf16(x, w1, b1, w2, b2):
    # Mirrors the kernel's numerics: bf16 matmul operands, f32 accumulation,
    # f32 bias + ReLU epilogue.
    h = jnp.dot(x.astype(jnp.bfloat16), w1.astype(jnp.bfloat16),
                preferred_element_type=jnp.float32)
    h = jnp.maximum(h + b1, 0.0)
    y = jnp.dot(h.astype(jnp.bfloat16), w2.astype(jnp.bfloat16),
                preferred_element_type=jnp.float32)
    return jnp.maximum(y + b2, 0.0)


if __name__ == "__main__":
    # DQN(in_size, hid_size, out_size, lr) — forward only (lr/optimizer unused).
    batch, in_size, hid_size, out_size = 2, 16, 32, 8

    key = jax.random.PRNGKey(0)
    k_x, k_p, k_big = jax.random.split(key, 3)
    x = jax.random.normal(k_x, (batch, in_size), dtype=jnp.float32)
    w1, b1, w2, b2 = init_dqn_params(k_p, in_size, hid_size, out_size)

    # One-time param prep (bf16 weights, lane-dense hidden width) — off hot path.
    padded_params = prepare_params(w1, b1, w2, b2)

    # Small-batch (no-grid) path.
    out = jax.block_until_ready(dqn_forward(x, padded_params))
    assert out.shape == (batch, out_size)
    ref_bf16 = _reference_bf16(x, w1, b1, w2, b2)
    ref_f32 = _reference_f32(x, w1, b1, w2, b2)
    assert jnp.allclose(out, ref_bf16, atol=1e-3, rtol=1e-3)
    assert jnp.allclose(out, ref_f32, atol=1e-1, rtol=1e-1)

    # Fused greedy-action path (online action selection).
    act = jax.block_until_ready(dqn_greedy_action(x, padded_params))
    assert act.shape == (batch,)
    assert jnp.array_equal(act, jnp.argmax(out, axis=-1))

    # Batch-tiled path (replay-buffer sized, non-divisible batch exercises the
    # partial-final-block masking; grid has >= 2 parallel steps).
    B_big = 2500
    x_big = jax.random.normal(k_big, (B_big, in_size), dtype=jnp.float32)
    out_big = jax.block_until_ready(dqn_forward(x_big, padded_params, batch_tile=1024))
    assert out_big.shape == (B_big, out_size)
    ref_big_bf16 = _reference_bf16(x_big, w1, b1, w2, b2)
    ref_big_f32 = _reference_f32(x_big, w1, b1, w2, b2)
    assert jnp.allclose(out_big, ref_big_bf16, atol=1e-3, rtol=1e-3)
    assert jnp.allclose(out_big, ref_big_f32, atol=1e-1, rtol=1e-1)

    print("KERNEL_OK")
</pallas_src>

<mosaic_0001>
module attributes {stable_mosaic.version = 11 : i64} {
  func.func @dqn_mlp_kernel(%arg0: memref<2x16xf32, #tpu.memory_space<vmem>>, %arg1: memref<16x128xbf16, #tpu.memory_space<vmem>>, %arg2: memref<1x128xf32, #tpu.memory_space<vmem>>, %arg3: memref<128x8xbf16, #tpu.memory_space<vmem>>, %arg4: memref<1x8xf32, #tpu.memory_space<vmem>>, %arg5: memref<2x8xf32, #tpu.memory_space<vmem>>) attributes {dimension_semantics = [], scalar_prefetch = 0 : i64, scratch_operands = 0 : i64, tpu.core_type = #tpu.core_type<tc>} {
    %c0 = arith.constant 0 : index
    %c0_0 = arith.constant 0 : index
    %0 = vector.load %arg0[%c0, %c0_0] : memref<2x16xf32, #tpu.memory_space<vmem>>, vector<2x16xf32>
    %1 = arith.truncf %0 : vector<2x16xf32> to vector<2x16xbf16>
    %c0_1 = arith.constant 0 : index
    %c0_2 = arith.constant 0 : index
    %2 = vector.load %arg1[%c0_1, %c0_2] : memref<16x128xbf16, #tpu.memory_space<vmem>>, vector<16x128xbf16>
    %cst = arith.constant dense<0.000000e+00> : vector<2x128xf32>
    %3 = tpu.matmul %1, %2, %cst {dimension_numbers = #tpu.dot_dimension_numbers<[1], [0], [0], [1], [0, 0, 1, 1], [], []>} : vector<2x16xbf16>, vector<16x128xbf16>, vector<2x128xf32> -> vector<2x128xf32>
    %c0_3 = arith.constant 0 : index
    %c0_4 = arith.constant 0 : index
    %4 = vector.load %arg2[%c0_3, %c0_4] : memref<1x128xf32, #tpu.memory_space<vmem>>, vector<1x128xf32>
    %5 = vector.broadcast %4 : vector<1x128xf32> to vector<2x128xf32>
    %6 = arith.addf %3, %5 : vector<2x128xf32>
    %cst_5 = arith.constant 0.000000e+00 : f32
    %7 = vector.broadcast %cst_5 : f32 to vector<2x128xf32>
    %8 = arith.maximumf %6, %7 : vector<2x128xf32>
    %9 = arith.truncf %8 : vector<2x128xf32> to vector<2x128xbf16>
    %c0_6 = arith.constant 0 : index
    %c0_7 = arith.constant 0 : index
    %10 = vector.load %arg3[%c0_6, %c0_7] : memref<128x8xbf16, #tpu.memory_space<vmem>>, vector<128x8xbf16>
    %cst_8 = arith.constant dense<0.000000e+00> : vector<2x8xf32>
    %11 = tpu.matmul %9, %10, %cst_8 {dimension_numbers = #tpu.dot_dimension_numbers<[1], [0], [0], [1], [0, 0, 1, 1], [], []>} : vector<2x128xbf16>, vector<128x8xbf16>, vector<2x8xf32> -> vector<2x8xf32>
    %c0_9 = arith.constant 0 : index
    %c0_10 = arith.constant 0 : index
    %12 = vector.load %arg4[%c0_9, %c0_10] : memref<1x8xf32, #tpu.memory_space<vmem>>, vector<1x8xf32>
    %13 = vector.broadcast %12 : vector<1x8xf32> to vector<2x8xf32>
    %14 = arith.addf %11, %13 : vector<2x8xf32>
    %cst_11 = arith.constant 0.000000e+00 : f32
    %15 = vector.broadcast %cst_11 : f32 to vector<2x8xf32>
    %16 = arith.maximumf %14, %15 : vector<2x8xf32>
    %c0_12 = arith.constant 0 : index
    %c0_13 = arith.constant 0 : index
    %17 = vector.load %arg5[%c0_12, %c0_13] : memref<2x8xf32, #tpu.memory_space<vmem>>, vector<2x8xf32>
    tpu.vector_store %arg5[%c0_12, %c0_13], %16 {strides = array<i32>} : memref<2x8xf32, #tpu.memory_space<vmem>>, vector<2x8xf32>,
    return
  }
}

</mosaic_0001>

<bundles_post_ra>
// kernel: tpu_custom_call.1
= control target key start
LH: loop header
LB: loop body
LE: loop exit
PB: predicated region body
PF: predicated region fallthrough
CT: control target
= control target key end

     0   :  { %v296_v1 = vmov 0.0   ;;  %vm297_vm0 = vmmov 0   ;;  %vm39_vm1 = vcmask 130048   ;;  %s368_s0 = inlined_call_operand.vmem [shape: f32[2,16], index: 0, kind: input, shape index: {}]   ;;  %s369_s1 = inlined_call_operand.vmem [shape: bf16[16,128], index: 1, kind: input, shape index: {}]   ;;  %s370_s2 = inlined_call_operand.vmem [shape: f32[1,128], index: 2, kind: input, shape index: {}]   ;;  %s371_s3 = inlined_call_operand.vmem [shape: bf16[128,8], index: 3, kind: input, shape index: {}]   ;;  %s372_s4 = inlined_call_operand.vmem [shape: f32[1,8], index: 4, kind: input, shape index: {}]   ;;  %s373_s5 = inlined_call_operand.hbm [shape: f32[2,8], index: 5, kind: output, shape index: {}]  }
   0x1   :  { %v265_v0 = vld [vmem:[%s369_s1] sm:$0xff]   ;;  %236 = vmatprep.subr.bf16.mxu0 %v296_v1  ;;  %242 = vmatprep.subr.bf16.mxu1 %v296_v1  ;;  %v266_v4 = vld [vmem:[%s371_s3 + $0x38] sm:$0xff]   ;;  %v267_v5 = vld [vmem:[%s371_s3 + $0x30] sm:$0xff]  }
   0x2   :  { %v22_v2 = vld [vmem:[%s368_s0] sm:$0x3]  ;;  %237 = vmatpush3.bf16.msra.mxu0 %v265_v0  ;;  %238 = vmatprep.mubr.msk.bf16.mxu0 %vm297_vm0, %v296_v1  ;;  %v268_v6 = vld [vmem:[%s371_s3 + $0x28] sm:$0xff]  }
   0x3   :  { %v23_v3 = vpack.c.bf16 %v22_v2, %v22_v2  ;;  %258 = vmatprep.mubr.msk.bf16.mxu1 %vm297_vm0, %v296_v1  ;;  %243 = vmatpush3.bf16.msra.mxu1 %v266_v4 }
   0x4   :  { %244 = vmatprep.subr.bf16.mxu1 %v296_v1 }
   0x5   :  { %239 = vmatmul.mubr.msk.bf16.vlgmr.msra.gmra.mxu0 %vm39_vm1, %v23_v3 }
   0x7   :  { %245 = vmatpush3.bf16.msra.mxu1 %v267_v5 }
   0x8   :  { %246 = vmatprep.subr.bf16.mxu1 %v296_v1 }
   0x9   :  { %10 = vsyncpa [#allocation3], 0  ;;  %v269_v7 = vld [vmem:[%s371_s3 + $0x20] sm:$0xff]   ;;  %v270_v8 = vld [vmem:[%s371_s3 + $0x18] sm:$0xff]   ;;  %s298_s15 = smov [#allocation2]   ;;  %vm197_vm2 = vcmask 58368  }
   0xa   :  { %v271_v9 = vld [vmem:[%s371_s3 + $0x10] sm:$0xff]   ;;  %v272_v10 = vld [vmem:[%s371_s3 + $0x8] sm:$0xff]   ;;  %v273_v11 = vld [vmem:[%s371_s3] sm:$0xff]   ;;  %s205_s3 = sshll.u32 %s298_s15, 4  ;;  %s206_s3 = int_to_ptr.vmem [resolvable:$true] %s205_s3 }
   0xb   :  { %247 = vmatpush3.bf16.msra.mxu1 %v268_v6  ;;  %v213_v12 = vld [vmem:[%s370_s2] ss:$0 sm:$0xff]  ;;  %s274_s2 = scalar_lea.vmem %s206_s3, 32  ;;  %p279_p1 = scmp.lt.s32.totalorder %s206_s3, %s206_s3 }
   0xc   :  { %248 = vmatprep.subr.bf16.mxu1 %v296_v1  ;;  %v216_v20 = vld [vmem:[%s372_s4] ss:$0 sm:$0xff]  ;;  %p275_p0 = scmp.ne.s32.totalorder %s206_s3, %s274_s2  ;;  %p280_p2 = scmp.lt.s32.totalorder %s274_s2, %s274_s2 }
   0xe   :  { %p281_p3 = por %p280_p2, %p279_p1 }
   0xf   :  { %249 = vmatpush3.bf16.msra.mxu1 %v269_v7 }
  0x10   :  { %250 = vmatprep.subr.bf16.mxu1 %v296_v1  ;;  %p282_p4 = pnand %p281_p3, %p275_p0 }
  0x13   :  { %251 = vmatpush3.bf16.msra.mxu1 %v270_v8 }
  0x14   :  { %252 = vmatprep.subr.bf16.mxu1 %v296_v1 }
  0x17   :  { %253 = vmatpush3.bf16.msra.mxu1 %v271_v9 }
  0x18   :  { %254 = vmatprep.subr.bf16.mxu1 %v296_v1 }
  0x1b   :  { %255 = vmatpush3.bf16.msra.mxu1 %v272_v10 }
  0x1c   :  { %256 = vmatprep.subr.bf16.mxu1 %v296_v1 }
  0x1f   :  { %257 = vmatpush3.bf16.msra.mxu1 %v273_v11 }
  0xc5   :  { %v77_v13 = vpop.f32.mrf.mxu0 }
  0xc6   :  { %v78_v14 = vadd.f32 %v213_v12, %v77_v13 }
  0xc7   :  { %v240_v15 = vpop.f32.mrf.mxu0 }
  0xc8   :  { %v83_v16 = vmax.f32 %v78_v14, 0.0 }
  0xc9   :  { %v80_v17 = vpop.f32.mrf.mxu0 }
  0xca   :  { %v84_v18 = vpack.c.bf16 %v83_v16, %v83_v16 }
  0xcb   :  { %v241_v19 = vpop.f32.mrf.mxu0 }
  0xcc   :  { %259 = vmatmul.mubr.bf16.vlgmr.msra.gmra.mxu1 %v84_v18 }
 0x18c   :  { %v190_v21 = vpop.f32.mrf.mxu1 }
 0x18d   :  { %v191_v22 = vadd.f32 %v216_v20, %v190_v21 }
 0x18e   :  { %v260_v23 = vpop.f32.mrf.mxu1 }
 0x18f   :  { %v196_v24 = vmax.f32 %v191_v22, 0.0 }
 0x190   :  { %v193_v25 = vpop.f32.mrf.mxu1 }
 0x191   :  { %198 = vst.msk [vmem:[#allocation2] sm:$0x3] %vm197_vm2, %v196_v24 }
 0x192   :  { %v261_v26 = vpop.f32.mrf.mxu1 }
 0x193   :  { %285 = shalt.err (!%p282_p4)
}
 0x194   :  { %208 = dma.vmem_to_hbm [thread:$0]  %s206_s3, 32, %s373_s5, [#allocation3]  }
 0x195   :  { %294 = dma.done.wait [#allocation3], 32  }
 0x196   :  { %295 = vsyncadd [#allocation3], 4294967264 }
 0x197   :  { %212 = vsyncpa [#allocation3], 1 }

</bundles_post_ra>
